<compile_context>
chip_gen: v7x
topology: tpu7x:2x2x1
jax: 0.10.0
libtpu: 0.0.40
codegen_flags: <defaults>
</compile_context>

<pallas_src>
import functools

import jax
import jax.numpy as jnp
from jax.experimental import pallas as pl
from jax.experimental.pallas import tpu as pltpu


def _round_up(x, m):
    return ((x + m - 1) // m) * m


# ----------------------------------------------------------------------------
# Hardware queries (best-effort, with safe fallbacks)
# ----------------------------------------------------------------------------
def _device_kind():
    try:
        return jax.devices()[0].device_kind.lower()
    except Exception:
        return ""


def _is_v5e():
    kind = _device_kind()
    return ("v5 lite" in kind) or ("v5e" in kind) or ("v5lite" in kind)


def _num_tensorcores():
    # v7x has 2 TensorCores per chip; v5e/v6e have 1.
    return 2 if "v7" in _device_kind() else 1


def _vmem_capacity_bytes():
    try:
        cap = getattr(pltpu.get_tpu_info(), "vmem_capacity_bytes", None)
        if cap:
            return int(cap)
    except Exception:
        pass
    return (64 << 20) if "v7" in _device_kind() else (128 << 20)


def _default_tm():
    # v5e roofline only needs ~240 FLOPs/byte -> tm~256 is enough; v6e/v7x
    # need a larger token tile to reach the MXU roofline.
    return 256 if _is_v5e() else 512


# ----------------------------------------------------------------------------
# VMEM budgeting (conservative: double-buffered inputs/outputs + f32 temps)
# ----------------------------------------------------------------------------
def _resident_vmem_bytes(tm, Dp, Fp, out_itemsize):
    b = 2  # bf16
    return (2 * tm * Dp * b                  # x tile (double-buffered)
            + 2 * Dp * (2 * Fp) * b          # wgu (counted double-buffered)
            + 2 * Fp * Dp * b                # wd
            + 2 * tm * Dp * out_itemsize     # output tile
            + 2 * tm * (2 * Fp) * 4          # gu f32 result + gate/up slices
            + tm * Fp * 2                    # inter bf16
            + tm * Dp * 4)                   # down-proj f32 result


def _tiled_vmem_bytes(tm, tf, Dp, Fp, out_itemsize):
    b = 2
    return (2 * tm * Dp * b                        # x tile
            + 2 * (2 * Dp * tf + tf * Dp) * b      # gate/up/down weight tiles
            + 2 * tm * Dp * out_itemsize           # output tile
            + tm * Dp * 4                          # f32 accumulator scratch
            + 2 * tm * (2 * tf) * 4                # gate/up f32 intermediates
            + tm * tf * 2                          # inter bf16
            + tm * Dp * 4)                         # partial down-proj f32


def _select_tiles(M, Dp, Fp, out_itemsize, tm_req, tf_req):
    cap = _vmem_capacity_bytes()
    budget = int(0.80 * cap)
    ncores = _num_tensorcores()

    # ---- token tile -------------------------------------------------------
    tm = tm_req if tm_req is not None else _default_tm()
    tm = max(16, min(_round_up(int(tm), 16), _round_up(M, 16)))
    if ncores >= 2 and M > 16:
        # Megacore guard: make sure every TensorCore gets at least one tile.
        tm = min(tm, max(16, _round_up(-(-M // ncores), 16)))

    # ---- feature tile candidates (divisors of Fp, multiples of 128) --------
    cands = [Fp // k for k in range(1, Fp // 128 + 1)
             if Fp % k == 0 and (Fp // k) % 128 == 0]
    if tf_req is not None:
        filtered = [c for c in cands if c <= int(tf_req)]
        cands = filtered if filtered else [cands[-1]]

    while True:
        # Prefer the weight-resident single-step path when it fits VMEM.
        if cands[0] == Fp and _resident_vmem_bytes(tm, Dp, Fp, out_itemsize) <= budget:
            return tm, Fp, cap
        for tf in cands:
            if _tiled_vmem_bytes(tm, tf, Dp, Fp, out_itemsize) <= budget:
                return tm, tf, cap
        if tm <= 16:
            return tm, cands[-1], cap
        tm = max(16, _round_up(tm // 2, 16))


# ----------------------------------------------------------------------------
# Weight preparation (done ONCE, outside the per-call wrapper)
# ----------------------------------------------------------------------------
def prepare_ffn_weights(gate_w, up_w, down_w, dtype=jnp.bfloat16):
    """Cast to bf16, pad D/F to multiples of 128, concat gate|up.

    gate_w, up_w: [D, F] (= nn.Linear.weight.T);  down_w: [F, D].
    Returns (wgu [Dp, 2*Fp], wd [Fp, Dp]).  Zero padding contributes exactly
    zero to the result (silu(0) * 0 = 0, padded wd columns are zero).
    """
    D, F = gate_w.shape
    Dp, Fp = _round_up(D, 128), _round_up(F, 128)

    def pad2(w, r, c):
        return jnp.pad(w, ((0, r - w.shape[0]), (0, c - w.shape[1])))

    g = pad2(gate_w.astype(dtype), Dp, Fp)
    u = pad2(up_w.astype(dtype), Dp, Fp)
    wd = pad2(down_w.astype(dtype), Fp, Dp)
    wgu = jnp.concatenate([g, u], axis=1)   # [Dp, 2*Fp]: gate cols | up cols
    return wgu, wd


# ----------------------------------------------------------------------------
# Kernels
# ----------------------------------------------------------------------------
def ffn_kernel_resident(x_ref, wgu_ref, wd_ref, o_ref):
    # x_ref  : [tm, Dp]   bf16 token tile
    # wgu_ref: [Dp, 2*Fp] bf16 (VMEM-resident: fetched once for all token tiles)
    # wd_ref : [Fp, Dp]   bf16 (VMEM-resident)
    # o_ref  : [tm, Dp]
    Fp = wd_ref.shape[0]
    x = x_ref[...]
    gu = jnp.dot(x, wgu_ref[...], preferred_element_type=jnp.float32)
    gate = gu[:, :Fp]
    up = gu[:, Fp:]
    gate = gate * jax.nn.sigmoid(gate)             # SiLU in f32 (VPU + EUP)
    inter = (gate * up).astype(jnp.bfloat16)       # bf16 operand -> fast MXU path
    o_ref[...] = jnp.dot(inter, wd_ref[...],
                         preferred_element_type=jnp.float32).astype(o_ref.dtype)


def ffn_kernel_tiled(x_ref, wg_ref, wu_ref, wd_ref, o_ref, acc_ref):
    # F-tiled fallback (weights too large to be VMEM-resident).
    # x_ref  : [tm, Dp] bf16 (resident across the F axis)
    # wg/wu  : [Dp, tf] bf16 gate / up weight tiles (two views of wgu)
    # wd_ref : [tf, Dp] bf16 down-projection tile
    # acc_ref: [tm, Dp] f32 accumulator across F tiles
    f = pl.program_id(1)
    nf = pl.num_programs(1)

    x = x_ref[...]
    gate = jnp.dot(x, wg_ref[...], preferred_element_type=jnp.float32)
    up = jnp.dot(x, wu_ref[...], preferred_element_type=jnp.float32)
    gate = gate * jax.nn.sigmoid(gate)
    inter = (gate * up).astype(jnp.bfloat16)
    partial = jnp.dot(inter, wd_ref[...], preferred_element_type=jnp.float32)

    @pl.when(f == 0)
    def _():
        acc_ref[...] = partial                      # no separate zero-init pass

    @pl.when(jnp.logical_and(f > 0, f < nf - 1))
    def _():
        acc_ref[...] = acc_ref[...] + partial

    @pl.when(f == nf - 1)
    def _():
        o_ref[...] = (acc_ref[...] + partial).astype(o_ref.dtype)  # fused writeback


# ----------------------------------------------------------------------------
# Wrapper
# ----------------------------------------------------------------------------
@functools.partial(jax.jit, static_argnames=("tm", "tf"))
def feed_forward(x, wgu, wd, *, tm=None, tf=None):
    """SwiGLU FFN: (silu(x @ Wg) * (x @ Wu)) @ Wd.  Dropout is identity (eval).

    x: [B, S, D];  wgu, wd from prepare_ffn_weights().
    """
    B, S, D = x.shape
    Fp, Dp = wd.shape
    out_dtype = x.dtype
    M = B * S

    tm_sel, tf_sel, cap = _select_tiles(
        M, Dp, Fp, jnp.dtype(out_dtype).itemsize, tm, tf)
    Mp = _round_up(M, tm_sel)
    nf = Fp // tf_sel

    # x is cast/padded per call (it changes per call); weights were prepared once.
    xb = x.reshape(M, D).astype(jnp.bfloat16)
    if Mp != M or Dp != D:
        xb = jnp.pad(xb, ((0, Mp - M), (0, Dp - D)))

    if nf == 1:
        est = _resident_vmem_bytes(tm_sel, Dp, Fp, jnp.dtype(out_dtype).itemsize)
    else:
        est = _tiled_vmem_bytes(tm_sel, tf_sel, Dp, Fp, jnp.dtype(out_dtype).itemsize)
    # Generous headroom, but never exceed ~85% of the physical chip VMEM
    # (64 MiB on v7x, 128 MiB on v5e/v6e).
    vmem_limit = max(16 << 20, min(int(1.5 * est) + (4 << 20), int(0.85 * cap)))

    if nf == 1:
        # Weight-resident single-step path: weights DMA'd once per call.
        out = pl.pallas_call(
            ffn_kernel_resident,
            out_shape=jax.ShapeDtypeStruct((Mp, Dp), out_dtype),
            grid_spec=pltpu.PrefetchScalarGridSpec(
                num_scalar_prefetch=0,
                grid=(Mp // tm_sel,),
                in_specs=[
                    pl.BlockSpec((tm_sel, Dp), lambda i: (i, 0)),
                    pl.BlockSpec((Dp, 2 * Fp), lambda i: (0, 0)),
                    pl.BlockSpec((Fp, Dp), lambda i: (0, 0)),
                ],
                out_specs=pl.BlockSpec((tm_sel, Dp), lambda i: (i, 0)),
            ),
            compiler_params=pltpu.CompilerParams(
                dimension_semantics=("parallel",),
                vmem_limit_bytes=vmem_limit,
            ),
        )(xb, wgu, wd)
    else:
        # F-tiled fallback: gate and up tiles are two views of the same wgu array.
        out = pl.pallas_call(
            ffn_kernel_tiled,
            out_shape=jax.ShapeDtypeStruct((Mp, Dp), out_dtype),
            grid_spec=pltpu.PrefetchScalarGridSpec(
                num_scalar_prefetch=0,
                grid=(Mp // tm_sel, nf),
                in_specs=[
                    pl.BlockSpec((tm_sel, Dp), lambda i, f: (i, 0)),
                    pl.BlockSpec((Dp, tf_sel), lambda i, f: (0, f)),            # gate cols
                    pl.BlockSpec((Dp, tf_sel), lambda i, f, n=nf: (0, n + f)),  # up cols
                    pl.BlockSpec((tf_sel, Dp), lambda i, f: (f, 0)),
                ],
                out_specs=pl.BlockSpec((tm_sel, Dp), lambda i, f: (i, 0)),
                scratch_shapes=[pltpu.VMEM((tm_sel, Dp), jnp.float32)],
            ),
            compiler_params=pltpu.CompilerParams(
                dimension_semantics=("parallel", "arbitrary"),
                vmem_limit_bytes=vmem_limit,
            ),
        )(xb, wgu, wgu, wd)

    return out[:M, :D].reshape(B, S, D)


# ----------------------------------------------------------------------------
# References
# ----------------------------------------------------------------------------
def ref_ffn_bf16(x, wg, wu, wd):
    """Pure-JAX reference with the same bf16-operand / f32-accumulate recipe."""
    B, S, D = x.shape
    xb = x.reshape(-1, D).astype(jnp.bfloat16)
    g = jnp.dot(xb, wg.astype(jnp.bfloat16), preferred_element_type=jnp.float32)
    g = g * jax.nn.sigmoid(g)
    u = jnp.dot(xb, wu.astype(jnp.bfloat16), preferred_element_type=jnp.float32)
    inter = (g * u).astype(jnp.bfloat16)
    out = jnp.dot(inter, wd.astype(jnp.bfloat16), preferred_element_type=jnp.float32)
    return out.astype(x.dtype).reshape(B, S, D)


def ref_ffn_f32(x, wg, wu, wd):
    B, S, D = x.shape
    x2 = x.reshape(-1, D)
    g = jax.nn.silu(x2 @ wg)
    return ((g * (x2 @ wu)) @ wd).reshape(B, S, D)


def _make_inputs(key, B, S, D, F):
    kx, kg, ku, kd = jax.random.split(key, 4)
    x = jax.random.normal(kx, (B, S, D), dtype=jnp.float32)
    sg = 1.0 / jnp.sqrt(D)
    sd = 1.0 / jnp.sqrt(F)
    wg = jax.random.uniform(kg, (D, F), jnp.float32, -sg, sg)
    wu = jax.random.uniform(ku, (D, F), jnp.float32, -sg, sg)
    wd = jax.random.uniform(kd, (F, D), jnp.float32, -sd, sd)
    return x, wg, wu, wd


if __name__ == "__main__":
    key = jax.random.PRNGKey(0)
    k1, k2 = jax.random.split(key)

    # Config 1: small shapes consistent with the module (emb_dim=128,
    # intermediate=256, batch=2, seq=8, dropout identity / inference).
    # Exercises the weight-resident single-step path (fused gate|up dot).
    B, S, D, F = 2, 8, 128, 256
    x, wg, wu, wd = _make_inputs(k1, B, S, D, F)
    wgu_p, wd_p = prepare_ffn_weights(wg, wu, wd)          # prepared ONCE
    out = jax.block_until_ready(feed_forward(x, wgu_p, wd_p))
    assert out.shape == (B, S, D)
    ref_b = ref_ffn_bf16(x, wg, wu, wd)
    ref_f = ref_ffn_f32(x, wg, wu, wd)
    assert jnp.allclose(out, ref_b, atol=2e-3, rtol=2e-3), "mismatch vs bf16 reference"
    assert jnp.allclose(out, ref_f, atol=1e-1, rtol=1e-1), "mismatch vs f32 reference"

    # Config 2: exercises token padding (M=140), D padding (192 -> 256 lanes),
    # and the F-tiled accumulator path (F=512, tf=256 -> 2 reduction steps).
    B2, S2, D2, F2 = 2, 70, 192, 512
    x2, wg2, wu2, wd2 = _make_inputs(k2, B2, S2, D2, F2)
    wgu2_p, wd2_p = prepare_ffn_weights(wg2, wu2, wd2)
    out2 = jax.block_until_ready(feed_forward(x2, wgu2_p, wd2_p, tf=256))
    assert out2.shape == (B2, S2, D2)
    ref2 = ref_ffn_bf16(x2, wg2, wu2, wd2)
    assert jnp.allclose(out2, ref2, atol=2e-3, rtol=2e-3), "mismatch vs bf16 reference (tiled F)"

    print("KERNEL_OK")
</pallas_src>

<mosaic_0001>
module attributes {stable_mosaic.version = 11 : i64} {
  func.func @ffn_kernel_resident(%arg0: i32, %arg1: memref<16x128xbf16, #tpu.memory_space<vmem>>, %arg2: memref<128x512xbf16, #tpu.memory_space<vmem>>, %arg3: memref<256x128xbf16, #tpu.memory_space<vmem>>, %arg4: memref<16x128xf32, #tpu.memory_space<vmem>>) attributes {dimension_semantics = [#tpu.dimension_semantics<parallel>], iteration_bounds = array<i64: 1>, scalar_prefetch = 0 : i64, scratch_operands = 0 : i64, tpu.core_type = #tpu.core_type<tc>, window_params = [{transform_indices = @transform_0, window_bounds = array<i64: 16, 128>}, {pipeline_mode = #tpu.pipeline_mode<synchronous>, transform_indices = @transform_1, window_bounds = array<i64: 128, 512>}, {pipeline_mode = #tpu.pipeline_mode<synchronous>, transform_indices = @transform_2, window_bounds = array<i64: 256, 128>}, {transform_indices = @transform_3, window_bounds = array<i64: 16, 128>}]} {
    %c0 = arith.constant 0 : index
    %c0_0 = arith.constant 0 : index
    %0 = vector.load %arg1[%c0, %c0_0] : memref<16x128xbf16, #tpu.memory_space<vmem>>, vector<16x128xbf16>
    %c0_1 = arith.constant 0 : index
    %c0_2 = arith.constant 0 : index
    %1 = vector.load %arg2[%c0_1, %c0_2] : memref<128x512xbf16, #tpu.memory_space<vmem>>, vector<128x512xbf16>
    %cst = arith.constant dense<0.000000e+00> : vector<16x512xf32>
    %2 = tpu.matmul %0, %1, %cst {dimension_numbers = #tpu.dot_dimension_numbers<[1], [0], [0], [1], [0, 0, 1, 1], [], []>} : vector<16x128xbf16>, vector<128x512xbf16>, vector<16x512xf32> -> vector<16x512xf32>
    %3 = vector.extract_strided_slice %2 {offsets = [0, 0], sizes = [16, 256], strides = [1, 1]} : vector<16x512xf32> to vector<16x256xf32>
    %4 = vector.extract_strided_slice %2 {offsets = [0, 256], sizes = [16, 256], strides = [1, 1]} : vector<16x512xf32> to vector<16x256xf32>
    %5 = arith.negf %3 : vector<16x256xf32>
    %6 = math.exp %5 : vector<16x256xf32>
    %cst_3 = arith.constant 1.000000e+00 : f32
    %7 = vector.broadcast %cst_3 : f32 to vector<16x256xf32>
    %8 = arith.addf %7, %6 : vector<16x256xf32>
    %9 = arith.divf %7, %8 : vector<16x256xf32>
    %10 = arith.mulf %3, %9 : vector<16x256xf32>
    %11 = arith.mulf %10, %4 : vector<16x256xf32>
    %12 = arith.truncf %11 : vector<16x256xf32> to vector<16x256xbf16>
    %c0_4 = arith.constant 0 : index
    %c0_5 = arith.constant 0 : index
    %13 = vector.load %arg3[%c0_4, %c0_5] : memref<256x128xbf16, #tpu.memory_space<vmem>>, vector<256x128xbf16>
    %cst_6 = arith.constant dense<0.000000e+00> : vector<16x128xf32>
    %14 = tpu.matmul %12, %13, %cst_6 {dimension_numbers = #tpu.dot_dimension_numbers<[1], [0], [0], [1], [0, 0, 1, 1], [], []>} : vector<16x256xbf16>, vector<256x128xbf16>, vector<16x128xf32> -> vector<16x128xf32>
    %c0_7 = arith.constant 0 : index
    %c0_8 = arith.constant 0 : index
    %15 = vector.load %arg4[%c0_7, %c0_8] : memref<16x128xf32, #tpu.memory_space<vmem>>, vector<16x128xf32>
    tpu.vector_store %arg4[%c0_7, %c0_8], %14 {strides = array<i32>} : memref<16x128xf32, #tpu.memory_space<vmem>>, vector<16x128xf32>,
    return
  }
  func.func @transform_0(%arg0: i32) -> (i32, i32) {
    %c0_i32 = arith.constant 0 : i32
    %c0_i32_0 = arith.constant 0 : i32
    return %arg0, %c0_i32 : i32, i32
  }
  func.func @transform_1(%arg0: i32) -> (i32, i32) {
    %c0_i32 = arith.constant 0 : i32
    %c0_i32_0 = arith.constant 0 : i32
    %c0_i32_1 = arith.constant 0 : i32
    return %c0_i32, %c0_i32_0 : i32, i32
  }
  func.func @transform_2(%arg0: i32) -> (i32, i32) {
    %c0_i32 = arith.constant 0 : i32
    %c0_i32_0 = arith.constant 0 : i32
    %c0_i32_1 = arith.constant 0 : i32
    return %c0_i32, %c0_i32_0 : i32, i32
  }
  func.func @transform_3(%arg0: i32) -> (i32, i32) {
    %c0_i32 = arith.constant 0 : i32
    %c0_i32_0 = arith.constant 0 : i32
    return %arg0, %c0_i32 : i32, i32
  }
}

</mosaic_0001>

<bundles_post_ra>
// kernel: feed_forward.1
= control target key start
LH: loop header
LB: loop body
LE: loop exit
PB: predicated region body
PF: predicated region fallthrough
CT: control target
= control target key end

     0   :  { %8 = vsyncpa [#allocation3], 0  ;;  %s860_s0 = inlined_call_operand.vmem [shape: bf16[16,128], index: 0, kind: input, shape index: {}]   ;;  %s861_s1 = inlined_call_operand.hbm [shape: bf16[128,512], index: 1, kind: input, shape index: {}]   ;;  %s862_s2 = inlined_call_operand.hbm [shape: bf16[256,128], index: 2, kind: input, shape index: {}]   ;;  %s863_s3 = inlined_call_operand.hbm [shape: f32[16,128], index: 3, kind: output, shape index: {}]  }
   0x1   :  { %9 = vsyncpa [#allocation6], 0 }
   0x2   :  { %10 = vsyncpa [#allocation4], 0  ;;  %s791_s12 = smov [#allocation2]   ;;  %s719_s16 = scalar_lea.hbm %s861_s1, 4096 }
   0x3   :  { %s18_s13 = sshll.u32 %s791_s12, 4  ;;  %p720_p0 = scmp.ne.s32.totalorder %s861_s1, %s719_s16  ;;  %s19_s13 = int_to_ptr.vmem [resolvable:$true] %s18_s13 }
   0x4   :  { %p723_p1 = scmp.lt.u32.totalorder %s719_s16, %s861_s1 }
   0x6   :  { %p725_p2 = pnand %p723_p1, %p720_p0 }
   0x8   :  { %728 = shalt.err (!%p725_p2)
}
   0x9   :  { %s729_s21 = scalar_lea.vmem %s19_s13, 4096  ;;  %p734_p4 = scmp.lt.s32.totalorder %s19_s13, %s19_s13 }
   0xa   :  { %p730_p3 = scmp.ne.s32.totalorder %s19_s13, %s729_s21  ;;  %p735_p5 = scmp.lt.s32.totalorder %s729_s21, %s729_s21 }
   0xc   :  { %p736_p6 = por %p735_p5, %p734_p4 }
   0xe   :  { %p737_p7 = pnand %p736_p6, %p730_p3 }
  0x10   :  { %740 = shalt.err (!%p737_p7)
}
  0x11   :  { %s792_s22 = smov 256   ;;  %s793_s23 = smov 16  }
  0x12   :  { %24 = dma.hbm_to_vmem [thread:$0]  %s861_s1, 4096, %s19_s13, [#allocation3], %s792_s22, %s792_s22, %s793_s23  }
  0x13   :  { %s794_s26 = smov [#allocation5]   ;;  %s741_s30 = scalar_lea.hbm %s862_s2, 2048 }
  0x14   :  { %s30_s27 = sshll.u32 %s794_s26, 4  ;;  %p742_p8 = scmp.ne.s32.totalorder %s862_s2, %s741_s30  ;;  %s31_s27 = int_to_ptr.vmem [resolvable:$true] %s30_s27 }
  0x15   :  { %p745_p9 = scmp.lt.u32.totalorder %s741_s30, %s862_s2 }
  0x17   :  { %p747_p10 = pnand %p745_p9, %p742_p8 }
  0x19   :  { %750 = shalt.err (!%p747_p10)
}
  0x1a   :  { %s751_s8 = scalar_lea.vmem %s31_s27, 2048  ;;  %p756_p12 = scmp.lt.s32.totalorder %s31_s27, %s31_s27 }
  0x1b   :  { %p752_p11 = scmp.ne.s32.totalorder %s31_s27, %s751_s8  ;;  %p757_p13 = scmp.lt.s32.totalorder %s751_s8, %s751_s8 }
  0x1d   :  { %p758_p0 = por %p757_p13, %p756_p12 }
  0x1f   :  { %p759_p1 = pnand %p758_p0, %p752_p11 }
  0x21   :  { %762 = shalt.err (!%p759_p1)
}
  0x22   :  { %s795_s1 = smov 64   ;;  %s796_s9 = smov 4  }
  0x23   :  { %36 = dma.hbm_to_vmem [thread:$0]  %s862_s2, 2048, %s31_s27, [#allocation6], %s795_s1, %s795_s1, %s796_s9  }
  0x24   :  { %785 = dma.done.wait [#allocation3], 4096  }
  0x25   :  { %786 = vsyncadd [#allocation3], 4294963200 }
  0x26   :  { %787 = dma.done.wait [#allocation6], 2048  }
  0x27   :  { %788 = vsyncadd [#allocation6], 4294965248  ;;  %v797_v0 = vmov 0   ;;  %v638_v1 = vld [vmem:[#allocation2 + $0x4] ss:$16 sps:$4 sm:$0xff]   ;;  %v689_v36 = vld [vmem:[#allocation5 + $0x48] sm:$0xff]  }
  0x28   :  { %276 = vmatprep.mubr.bf16.mxu0 %v797_v0  ;;  %319 = vmatprep.mubr.bf16.mxu1 %v797_v0  ;;  %v640_v2 = vld [vmem:[#allocation2] ss:$16 sps:$4 sm:$0xff]   ;;  %v641_v3 = vld [vmem:[#allocation2 + $0x24] ss:$16 sps:$4 sm:$0xff]   ;;  %v659_v8 = vld [vmem:[#allocation2 + $0xc] ss:$16 sps:$4 sm:$0xff]  }
  0x29   :  { %244 = vmatprep.subr.bf16.mxu0 %v638_v1  ;;  %v643_v4 = vld [vmem:[#allocation2 + $0x20] ss:$16 sps:$4 sm:$0xff]   ;;  %v644_v5 = vld [vmem:[#allocation2 + $0x44] ss:$16 sps:$4 sm:$0xff]   ;;  %v661_v9 = vld [vmem:[#allocation2 + $0x8] ss:$16 sps:$4 sm:$0xff]   ;;  %287 = vmatprep.subr.bf16.mxu1 %v659_v8 }
  0x2a   :  { %245 = vmatpush1.bf16.msra.mxu0 %v640_v2  ;;  %v646_v6 = vld [vmem:[#allocation2 + $0x40] ss:$16 sps:$4 sm:$0xff]   ;;  %v647_v7 = vld [vmem:[#allocation2 + $0x64] ss:$16 sps:$4 sm:$0xff]   ;;  %v665_v12 = vld [vmem:[#allocation2 + $0x2c] ss:$16 sps:$4 sm:$0xff]   ;;  %288 = vmatpush1.bf16.msra.mxu1 %v661_v9 }
  0x2b   :  { %246 = vmatprep.subr.bf16.mxu0 %v641_v3  ;;  %v649_v10 = vld [vmem:[#allocation2 + $0x60] ss:$16 sps:$4 sm:$0xff]   ;;  %v650_v11 = vld [vmem:[#allocation2 + $0x84] ss:$16 sps:$4 sm:$0xff]   ;;  %v667_v13 = vld [vmem:[#allocation2 + $0x28] ss:$16 sps:$4 sm:$0xff]   ;;  %289 = vmatprep.subr.bf16.mxu1 %v665_v12 }
  0x2c   :  { %v652_v14 = vld [vmem:[#allocation2 + $0x80] ss:$16 sps:$4 sm:$0xff]   ;;  %v669_v15 = vld [vmem:[#allocation2 + $0x4c] ss:$16 sps:$4 sm:$0xff]   ;;  %v653_v16 = vld [vmem:[#allocation2 + $0xa4] ss:$16 sps:$4 sm:$0xff]  }
  0x2d   :  { %v671_v17 = vld [vmem:[#allocation2 + $0x48] ss:$16 sps:$4 sm:$0xff]   ;;  %v672_v18 = vld [vmem:[#allocation2 + $0x6c] ss:$16 sps:$4 sm:$0xff]   ;;  %v655_v19 = vld [vmem:[#allocation2 + $0xa0] ss:$16 sps:$4 sm:$0xff]  }
  0x2e   :  { %247 = vmatpush1.bf16.msra.mxu0 %v643_v4  ;;  %290 = vmatpush1.bf16.msra.mxu1 %v667_v13  ;;  %v656_v20 = vld [vmem:[#allocation2 + $0xc4] ss:$16 sps:$4 sm:$0xff]   ;;  %v658_v21 = vld [vmem:[#allocation2 + $0xc0] ss:$16 sps:$4 sm:$0xff]   ;;  %v674_v22 = vld [vmem:[#allocation2 + $0x68] ss:$16 sps:$4 sm:$0xff]  }
  0x2f   :  { %248 = vmatprep.subr.bf16.mxu0 %v644_v5  ;;  %291 = vmatprep.subr.bf16.mxu1 %v669_v15  ;;  %v662_v23 = vld [vmem:[#allocation2 + $0xe4] ss:$16 sps:$4 sm:$0xff]   ;;  %v675_v24 = vld [vmem:[#allocation2 + $0x8c] ss:$16 sps:$4 sm:$0xff]   ;;  %v677_v25 = vld [vmem:[#allocation2 + $0x88] ss:$16 sps:$4 sm:$0xff]  }
  0x30   :  { %v678_v26 = vld [vmem:[#allocation2 + $0xac] ss:$16 sps:$4 sm:$0xff]   ;;  %v664_v27 = vld [vmem:[#allocation2 + $0xe0] ss:$16 sps:$4 sm:$0xff]   ;;  %v680_v28 = vld [vmem:[#allocation2 + $0xa8] ss:$16 sps:$4 sm:$0xff]  }
  0x31   :  { %v668_v29 = vld [vmem:[%s860_s0] sm:$0xff]   ;;  %v681_v30 = vld [vmem:[#allocation2 + $0xcc] ss:$16 sps:$4 sm:$0xff]   ;;  %v683_v31 = vld [vmem:[#allocation2 + $0xc8] ss:$16 sps:$4 sm:$0xff]   ;;  %s798_s0 = smov [#allocation7]  }
  0x32   :  { %249 = vmatpush1.bf16.msra.mxu0 %v646_v6  ;;  %292 = vmatpush1.bf16.msra.mxu1 %v671_v17  ;;  %v684_v32 = vld [vmem:[#allocation2 + $0xec] ss:$16 sps:$4 sm:$0xff]   ;;  %v686_v33 = vld [vmem:[#allocation2 + $0xe8] ss:$16 sps:$4 sm:$0xff]   ;;  %v687_v34 = vld [vmem:[#allocation5 + $0x40] sm:$0xff]   ;;  %s540_s13 = sshll.u32 %s798_s0, 4  ;;  %s541_s13 = int_to_ptr.vmem [resolvable:$true] %s540_s13 }
  0x33   :  { %250 = vmatprep.subr.bf16.mxu0 %v647_v7  ;;  %293 = vmatprep.subr.bf16.mxu1 %v672_v18  ;;  %v688_v35 = vld [vmem:[#allocation5] sm:$0xff]   ;;  %v690_v37 = vld [vmem:[#allocation5 + $0x8] sm:$0xff]   ;;  %v691_v38 = vld [vmem:[#allocation5 + $0x50] sm:$0xff]   ;;  %s763_s14 = scalar_lea.vmem %s541_s13, 256  ;;  %p768_p3 = scmp.lt.s32.totalorder %s541_s13, %s541_s13 }
  0x34   :  { %v692_v39 = vld [vmem:[#allocation5 + $0x10] sm:$0xff]   ;;  %v693_v40 = vld [vmem:[#allocation5 + $0x58] sm:$0xff]   ;;  %v695_v42 = vld [vmem:[#allocation5 + $0x60] sm:$0xff]   ;;  %p764_p2 = scmp.ne.s32.totalorder %s541_s13, %s763_s14  ;;  %p769_p4 = scmp.lt.s32.totalorder %s763_s14, %s763_s14 }
  0x35   :  { %v694_v41 = vld [vmem:[#allocation5 + $0x18] sm:$0xff]   ;;  %v696_v43 = vld [vmem:[#allocation5 + $0x20] sm:$0xff]   ;;  %v697_v44 = vld [vmem:[#allocation5 + $0x68] sm:$0xff]  }
  0x36   :  { %251 = vmatpush1.bf16.msra.mxu0 %v649_v10  ;;  %294 = vmatpush1.bf16.msra.mxu1 %v674_v22  ;;  %v698_v45 = vld [vmem:[#allocation5 + $0x28] sm:$0xff]   ;;  %v699_v46 = vld [vmem:[#allocation5 + $0x70] sm:$0xff]   ;;  %v701_v48 = vld [vmem:[#allocation5 + $0x78] sm:$0xff]   ;;  %p770_p5 = por %p769_p4, %p768_p3 }
  0x37   :  { %252 = vmatprep.subr.bf16.mxu0 %v650_v11  ;;  %295 = vmatprep.subr.bf16.mxu1 %v675_v24  ;;  %v700_v47 = vld [vmem:[#allocation5 + $0x30] sm:$0xff]   ;;  %v702_v49 = vld [vmem:[#allocation5 + $0x38] sm:$0xff]  }
  0x38   :  { %p771_p6 = pnand %p770_p5, %p764_p2 }
  0x3a   :  { %253 = vmatpush1.bf16.msra.mxu0 %v652_v14  ;;  %296 = vmatpush1.bf16.msra.mxu1 %v677_v25 }
  0x3b   :  { %254 = vmatprep.subr.bf16.mxu0 %v653_v16  ;;  %297 = vmatprep.subr.bf16.mxu1 %v678_v26 }
  0x3e   :  { %255 = vmatpush1.bf16.msra.mxu0 %v655_v19  ;;  %298 = vmatpush1.bf16.msra.mxu1 %v680_v28 }
  0x3f   :  { %256 = vmatprep.subr.bf16.mxu0 %v656_v20  ;;  %299 = vmatprep.subr.bf16.mxu1 %v681_v30 }
  0x42   :  { %257 = vmatpush1.bf16.msra.mxu0 %v658_v21  ;;  %300 = vmatpush1.bf16.msra.mxu1 %v683_v31 }
  0x43   :  { %258 = vmatprep.subr.bf16.mxu0 %v662_v23  ;;  %301 = vmatprep.subr.bf16.mxu1 %v684_v32 }
  0x46   :  { %259 = vmatpush1.bf16.msra.mxu0 %v664_v27  ;;  %302 = vmatpush1.bf16.msra.mxu1 %v686_v33 }
  0x47   :  { %606 = vmatprep.subr.bf16.mxu0 %v687_v34 }
  0x49   :  { %277 = vmatmul.mubr.bf16.vlgmr.msra.gmra.mrb[0].mxu0 %v668_v29  ;;  %320 = vmatmul.mubr.bf16.vlgmr.msra.gmra.mrb[0].mxu1 %v668_v29 }
  0x4a   :  { %607 = vmatpush3.bf16.msra.mxu0 %v688_v35 }
  0x4b   :  { %608 = vmatprep.subr.bf16.mxu0 %v689_v36 }
  0x4e   :  { %609 = vmatpush3.bf16.msra.mxu0 %v690_v37 }
  0x4f   :  { %610 = vmatprep.subr.bf16.mxu0 %v691_v38 }
  0x52   :  { %611 = vmatpush3.bf16.msra.mxu0 %v692_v39 }
  0x53   :  { %612 = vmatprep.subr.bf16.mxu0 %v693_v40 }
  0x56   :  { %613 = vmatpush3.bf16.msra.mxu0 %v694_v41 }
  0x57   :  { %614 = vmatprep.subr.bf16.mxu0 %v695_v42 }
  0x5a   :  { %615 = vmatpush3.bf16.msra.mxu0 %v696_v43 }
  0x5b   :  { %616 = vmatprep.subr.bf16.mxu0 %v697_v44 }
  0x5e   :  { %617 = vmatpush3.bf16.msra.mxu0 %v698_v45 }
  0x5f   :  { %618 = vmatprep.subr.bf16.mxu0 %v699_v46 }
  0x62   :  { %619 = vmatpush3.bf16.msra.mxu0 %v700_v47 }
  0x63   :  { %620 = vmatprep.subr.bf16.mxu0 %v701_v48 }
  0x66   :  { %621 = vmatpush3.bf16.msra.mxu0 %v702_v49 }
 0x11c   :  { %v278_v50 = vpop.f32.mrb[0].mxu0  ;;  %v321_v58 = vpop.f32.mrb[0].mxu1 }
 0x11d   :  { %v586_v51 = vmul.f32 -1.442695, %v278_v50  ;;  %v280_v52 = vpop.f32.mrb[1].mxu0  ;;  %v323_v59 = vpop.f32.mrb[1].mxu1 }
 0x11e   :  { %v587_v53 = vmul.f32 -1.442695, %v280_v52  ;;  %v282_v54 = vpop.f32.mrb[2].mxu0  ;;  %v325_v60 = vpop.f32.mrb[2].mxu1 }
 0x11f   :  { %703 = vpow2.f32 %v586_v51  ;;  %v588_v55 = vmul.f32 -1.442695, %v282_v54  ;;  %v284_v56 = vpop.f32.mrb[3].mxu0  ;;  %v327_v62 = vpop.f32.mrb[3].mxu1 }
 0x120   :  { %705 = vpow2.f32 %v587_v53  ;;  %v589_v57 = vmul.f32 -1.442695, %v284_v56 }
 0x121   :  { %707 = vpow2.f32 %v588_v55 }
 0x122   :  { %709 = vpow2.f32 %v589_v57 }
 0x129   :  { %v704_v61 = vpop.eup %703 }
 0x12a   :  { %v706_v63 = vpop.eup %705  ;;  %v342_v0 = vadd.f32 1.0, %v704_v61 }
 0x12b   :  { %v708_v1 = vpop.eup %707  ;;  %v343_v2 = vadd.f32 1.0, %v706_v63 }
 0x12c   :  { %v710_v3 = vpop.eup %709  ;;  %711 = vrcp.f32 %v342_v0  ;;  %v344_v4 = vadd.f32 1.0, %v708_v1 }
 0x12d   :  { %713 = vrcp.f32 %v343_v2  ;;  %v345_v5 = vadd.f32 1.0, %v710_v3 }
 0x12e   :  { %715 = vrcp.f32 %v344_v4 }
 0x12f   :  { %717 = vrcp.f32 %v345_v5 }
 0x136   :  { %v712_v6 = vpop.eup %711 }
 0x137   :  { %v714_v7 = vpop.eup %713  ;;  %v354_v8 = vmul.f32 %v712_v6, %v278_v50 }
 0x138   :  { %v716_v9 = vpop.eup %715  ;;  %v355_v10 = vmul.f32 %v714_v7, %v280_v52 }
 0x139   :  { %v718_v11 = vpop.eup %717  ;;  %v356_v12 = vmul.f32 %v716_v9, %v282_v54  ;;  %v358_v13 = vmul.f32 %v354_v8, %v321_v58 }
 0x13a   :  { %v357_v14 = vmul.f32 %v718_v11, %v284_v56  ;;  %v359_v15 = vmul.f32 %v355_v10, %v323_v59 }
 0x13b   :  { %v360_v16 = vmul.f32 %v356_v12, %v325_v60 }
 0x13c   :  { %v361_v17 = vmul.f32 %v357_v14, %v327_v62 }
 0x13d   :  { %v362_v18 = vpack.c.bf16 %v360_v16, %v358_v13 }
 0x13e   :  { %v363_v19 = vpack.c.bf16 %v361_v17, %v359_v15 }
 0x140   :  { %524 = vmatprep.mubr.bf16.mxu0 %v363_v19 }
 0x141   :  { %525 = vmatmul.mubr.bf16.vlgmr.msra.gmra.mrb[4].mxu0 %v362_v18 }
 0x214   :  { %v622_v20 = vpop.f32.mrb[4].mxu0 }
 0x215   :  { %v623_v21 = vpop.f32.mrb[5].mxu0 }
 0x216   :  { %v624_v22 = vadd.f32 %v623_v21, %v622_v20  ;;  %v625_v23 = vpop.f32.mrb[6].mxu0 }
 0x217   :  { %v626_v24 = vpop.f32.mrb[7].mxu0 }
 0x218   :  { %533 = vst [vmem:[#allocation7] sm:$0xff] %v624_v22  ;;  %v627_v25 = vadd.f32 %v626_v24, %v625_v23 }
 0x21a   :  { %534 = vst [vmem:[#allocation7 + $0x8] sm:$0xff] %v627_v25 }
 0x21b   :  { %774 = shalt.err (!%p771_p6)
}
 0x21c   :  { %s775_s17 = scalar_lea.hbm %s863_s3, 256 }
 0x21d   :  { %p776_p7 = scmp.ne.s32.totalorder %s863_s3, %s775_s17  ;;  %p779_p8 = scmp.lt.u32.totalorder %s775_s17, %s863_s3 }
 0x21f   :  { %p781_p9 = pnand %p779_p8, %p776_p7 }
 0x221   :  { %784 = shalt.err (!%p781_p9)
}
 0x222   :  { %s799_s22 = smov 128   ;;  %s800_s23 = smov 8  }
 0x223   :  { %546 = dma.vmem_to_hbm [thread:$0]  %s541_s13, 256, %s863_s3, [#allocation4], %s799_s22, %s799_s22, %s800_s23  }
 0x224   :  { %789 = dma.done.wait [#allocation4], 256  }
 0x225   :  { %790 = vsyncadd [#allocation4], 4294967040 }
 0x226   :  { %550 = vsyncpa [#allocation3], 1 }
 0x227   :  { %551 = vsyncpa [#allocation6], 1 }
 0x228   :  { %552 = vsyncpa [#allocation4], 1 }

</bundles_post_ra>
